<compile_context>
chip_gen: v7x
topology: tpu7x:2x2x1
jax: 0.10.0
libtpu: 0.0.40
codegen_flags: <defaults>
</compile_context>

<pallas_src>
import math

import jax
import jax.numpy as jnp
from jax.experimental import pallas as pl
from jax.experimental.pallas import tpu as pltpu


# ---------------------------------------------------------------------------
# Kernel
# ---------------------------------------------------------------------------
def _make_mlp_kernel(ti: int, weights_resident: bool):
    """Grid = (batch, seq-tile, I-chunk). Trailing axis is the fc3 reduction."""

    def kernel(x_ref, mod_ref, lnw_ref, w1_ref, w2_ref, w3_ref,
               o_ref, xm_ref, acc_ref):
        k = pl.program_id(2)

        # ---- once per (batch, seq-tile): LayerNorm + scale/shift modulation ----
        @pl.when(k == 0)
        def _():
            x = x_ref[0].astype(jnp.float32)                        # (TS, H)
            mean = jnp.mean(x, axis=-1, keepdims=True)
            xc = x - mean
            var = jnp.mean(xc * xc, axis=-1, keepdims=True)
            xn = xc * jax.lax.rsqrt(var + 1e-5) * lnw_ref[...].astype(jnp.float32)
            m = mod_ref[0].astype(jnp.float32)                      # (3, H)
            xm = xn * (m[0:1] + 1.0) + m[1:2]                       # scale / shift
            xm_ref[...] = xm.astype(xm_ref.dtype)                   # matmul operand dtype
            acc_ref[...] = jnp.zeros_like(acc_ref)

        # ---- weight chunk for this k step ----
        if weights_resident:
            # full weights live in VMEM; slice the k-chunk (128-aligned offsets)
            off = pl.multiple_of(k * ti, ti)
            w1 = w1_ref[:, pl.ds(off, ti)]                          # (H, TI)
            w2 = w2_ref[:, pl.ds(off, ti)]                          # (H, TI)
            w3 = w3_ref[pl.ds(off, ti), :]                          # (TI, H)
        else:
            # streamed chunk-major blocks (one contiguous DMA per chunk)
            w1 = w1_ref[0]                                          # (H, TI)
            w2 = w2_ref[0]                                          # (H, TI)
            w3 = w3_ref[0]                                          # (TI, H)

        # ---- SwiGLU on one I-chunk + fc3 partial accumulation (MXU, f32 acc) ----
        xm = xm_ref[...]                                            # (TS, H)
        h1 = jnp.dot(xm, w1, preferred_element_type=jnp.float32)    # (TS, TI)
        h2 = jnp.dot(xm, w2, preferred_element_type=jnp.float32)    # (TS, TI)
        h = (h1 * jax.nn.sigmoid(h1)) * h2                          # SiLU via EUP sigmoid
        acc_ref[...] += jnp.dot(h.astype(w3.dtype), w3,
                                preferred_element_type=jnp.float32)  # (TS, H)

        # ---- finalize: apply gate and write the output tile ----
        @pl.when(k == pl.num_programs(2) - 1)
        def _():
            gate = mod_ref[0].astype(jnp.float32)[2:3]              # (1, H)
            o_ref[0] = (acc_ref[...] * gate).astype(o_ref.dtype)

    return kernel


# ---------------------------------------------------------------------------
# Helpers
# ---------------------------------------------------------------------------
def _nbytes(shape, dtype):
    return math.prod(shape) * jnp.dtype(dtype).itemsize


def _pick_tile(n, cap, align):
    """Largest divisor of n that is <= cap and (a multiple of `align` or == n)."""
    cap = max(1, min(n, cap))
    for d in range(cap, 0, -1):
        if n % d == 0 and (d % align == 0 or d == n):
            return d
    return n


def _vmem_budget_bytes():
    """Generation-aware VMEM budget with a conservative (v7x) fallback."""
    try:
        cap = int(pltpu.get_tpu_info().vmem_capacity_bytes)
    except Exception:
        cap = 64 << 20   # v7x per-TC physical VMEM (worst case)
    return int(cap * 0.85)   # headroom for compiler-internal scratch


# ---------------------------------------------------------------------------
# Wrapper
# ---------------------------------------------------------------------------
def mlp_pallas(x, ada, lnw, wm, bm, w1, w2, w3, *,
               ts=None, ti=None, weights_resident=None):
    B, S, H = x.shape
    I = w1.shape[-1]

    # Hoisted modulation: a (B, A) x (A, 3H) GEMM is terrible MXU utilization
    # inside the kernel, so it runs once here (f32).  scale/shift/gate are
    # fused into one (B, 3, H) array -> a single small DMA per batch.
    mod = (jax.nn.silu(ada.astype(jnp.float32)) @ wm.astype(jnp.float32)
           + bm.astype(jnp.float32))                                  # (B, 3H)
    mod = mod.reshape(B, 3, H)

    # ---- tile selection -----------------------------------------------------
    # TS aligned to the activation dtype's sublane pack (8 f32 / 16 bf16 / 32 int8).
    sub_align = max(8, 32 // jnp.dtype(x.dtype).itemsize)
    TS = _pick_tile(S, 256 if ts is None else ts, sub_align)
    # v7x megacore: prefer an even number of parallel grid steps so both TCs work.
    if (B * (S // TS)) % 2 == 1:
        for cand in range(TS, 0, -1):
            if (S % cand == 0 and (cand % sub_align == 0 or cand == S)
                    and (B * (S // cand)) % 2 == 0):
                TS = cand
                break
    TI = _pick_tile(I, 512 if ti is None else ti, 128)
    assert S % TS == 0 and I % TI == 0
    KC = I // TI
    grid = (B, S // TS, KC)

    # ---- honest VMEM accounting + residency decision --------------------------
    def footprint(resident):
        f = 0
        f += 2 * _nbytes((1, TS, H), x.dtype)          # x tile (double-buffered)
        f += 2 * _nbytes((1, TS, H), x.dtype)          # out tile
        f += 2 * _nbytes((1, 3, H), jnp.float32)       # fused scale/shift/gate
        f += 2 * _nbytes((1, H), lnw.dtype)            # LN weight
        if resident:
            # constant-index blocks; budget x2 in case Pallas still double-buffers
            f += 2 * (2 * _nbytes((H, I), w1.dtype) + _nbytes((I, H), w3.dtype))
        else:
            f += 2 * (2 * _nbytes((1, H, TI), w1.dtype) + _nbytes((1, TI, H), w3.dtype))
        f += _nbytes((TS, H), w1.dtype)                # xm scratch
        f += _nbytes((TS, H), jnp.float32)             # fc3 accumulator
        return f

    budget = _vmem_budget_bytes()
    if weights_resident is None:
        weights_resident = footprint(True) <= budget
    fp = footprint(weights_resident)
    assert fp <= budget, (
        f"VMEM footprint {fp / 2**20:.1f} MiB exceeds budget {budget / 2**20:.1f} MiB; "
        "reduce TS/TI or pass weights_resident=False")
    vmem_limit = int(min(max(fp + (4 << 20), 32 << 20), budget))

    # ---- weight layout + BlockSpecs -----------------------------------------
    if weights_resident:
        w1_arg, w2_arg, w3_arg = w1, w2, w3
        w1_spec = pl.BlockSpec((H, I), lambda b, s, k: (0, 0))   # DMA'd once, resident
        w2_spec = pl.BlockSpec((H, I), lambda b, s, k: (0, 0))
        w3_spec = pl.BlockSpec((I, H), lambda b, s, k: (0, 0))
    else:
        # chunk-major layout: each per-k DMA is a single contiguous copy
        w1_arg = w1.reshape(H, KC, TI).transpose(1, 0, 2)        # (KC, H, TI)
        w2_arg = w2.reshape(H, KC, TI).transpose(1, 0, 2)        # (KC, H, TI)
        w3_arg = w3.reshape(KC, TI, H)                           # (KC, TI, H)
        w1_spec = pl.BlockSpec((1, H, TI), lambda b, s, k: (k, 0, 0))
        w2_spec = pl.BlockSpec((1, H, TI), lambda b, s, k: (k, 0, 0))
        w3_spec = pl.BlockSpec((1, TI, H), lambda b, s, k: (k, 0, 0))

    kernel = _make_mlp_kernel(TI, weights_resident)

    return pl.pallas_call(
        kernel,
        out_shape=jax.ShapeDtypeStruct((B, S, H), x.dtype),
        grid_spec=pltpu.PrefetchScalarGridSpec(
            num_scalar_prefetch=0,
            grid=grid,
            in_specs=[
                pl.BlockSpec((1, TS, H), lambda b, s, k: (b, s, 0)),   # x
                pl.BlockSpec((1, 3, H), lambda b, s, k: (b, 0, 0)),    # scale/shift/gate
                pl.BlockSpec((1, H), lambda b, s, k: (0, 0)),          # LN weight
                w1_spec, w2_spec, w3_spec,
            ],
            out_specs=pl.BlockSpec((1, TS, H), lambda b, s, k: (b, s, 0)),
            scratch_shapes=[
                pltpu.VMEM((TS, H), w1.dtype),       # modulated LN output (xm)
                pltpu.VMEM((TS, H), jnp.float32),    # fc3 accumulator
            ],
        ),
        compiler_params=pltpu.CompilerParams(
            dimension_semantics=("parallel", "parallel", "arbitrary"),
            vmem_limit_bytes=vmem_limit,
        ),
    )(x, mod, lnw, w1_arg, w2_arg, w3_arg)


# ---------------------------------------------------------------------------
# Pure-JAX reference of the PyTorch forward (f32 math)
# ---------------------------------------------------------------------------
def mlp_reference(x, ada, lnw, wm, bm, w1, w2, w3):
    xf = x.astype(jnp.float32)
    mean = jnp.mean(xf, axis=-1, keepdims=True)
    var = jnp.mean((xf - mean) ** 2, axis=-1, keepdims=True)
    xn = (xf - mean) / jnp.sqrt(var + 1e-5) * lnw[0].astype(jnp.float32)
    m = (jax.nn.silu(ada.astype(jnp.float32)) @ wm.astype(jnp.float32)
         + bm.astype(jnp.float32))                                    # (B, 3H)
    scale, shift, gate = jnp.split(m, 3, axis=-1)
    xm = xn * (scale[:, None, :] + 1.0) + shift[:, None, :]
    h = jax.nn.silu(xm @ w1.astype(jnp.float32)) * (xm @ w2.astype(jnp.float32))
    return (h @ w3.astype(jnp.float32)) * gate[:, None, :]


def xavier_uniform(key, fan_in, fan_out, dtype=jnp.float32):
    bound = (6.0 / (fan_in + fan_out)) ** 0.5
    return jax.random.uniform(key, (fan_in, fan_out), dtype, -bound, bound)


if __name__ == "__main__":
    # Small shapes that still exercise every code path:
    #   2 seq tiles (TS=16) and 2 I-chunks (TI=128) -> grid = (2, 2, 2).
    B, S, H, I, A = 2, 32, 32, 256, 16

    key = jax.random.PRNGKey(0)
    kx, ka, kw1, kw2, kw3, kwm, kbm = jax.random.split(key, 7)

    x = jax.random.normal(kx, (B, S, H), jnp.float32)
    ada = jax.random.normal(ka, (B, A), jnp.float32)

    # parameters stored as (in, out); PyTorch stores (out, in) and applies x @ W.T
    w1 = xavier_uniform(kw1, H, I)
    w2 = xavier_uniform(kw2, H, I)
    w3 = xavier_uniform(kw3, I, H)
    wm = 0.05 * jax.random.normal(kwm, (A, 3 * H), jnp.float32)   # PyTorch zero-inits; nonzero here
    bm = 0.05 * jax.random.normal(kbm, (1, 3 * H), jnp.float32)   # to exercise the gate path
    lnw = jnp.ones((1, H), jnp.float32)                           # LayerNorm weight (ones)

    ref = mlp_reference(x, ada, lnw, wm, bm, w1, w2, w3)

    # ---- f32, VMEM-resident weights (default path) ----
    out = mlp_pallas(x, ada, lnw, wm, bm, w1, w2, w3, ts=16, ti=128)
    out = jax.block_until_ready(out)
    assert out.shape == (B, S, H)
    assert jnp.allclose(out, ref, atol=1e-4, rtol=1e-4), (
        f"f32 resident max abs err = {jnp.max(jnp.abs(out - ref))}")

    # ---- f32, forced streaming path (chunk-major weight layout) ----
    out_s = mlp_pallas(x, ada, lnw, wm, bm, w1, w2, w3, ts=16, ti=128,
                       weights_resident=False)
    out_s = jax.block_until_ready(out_s)
    assert jnp.allclose(out_s, ref, atol=1e-4, rtol=1e-4), (
        f"f32 streaming max abs err = {jnp.max(jnp.abs(out_s - ref))}")

    # ---- bf16 weights/activations (recommended production dtype); MXU runs at
    #      bf16 rate, accumulation stays f32 inside the kernel ----
    xb = x.astype(jnp.bfloat16)
    w1b = w1.astype(jnp.bfloat16)
    w2b = w2.astype(jnp.bfloat16)
    w3b = w3.astype(jnp.bfloat16)
    out_bf16 = mlp_pallas(xb, ada, lnw, wm, bm, w1b, w2b, w3b, ts=16, ti=128)
    out_bf16 = jax.block_until_ready(out_bf16).astype(jnp.float32)
    err = float(jnp.max(jnp.abs(out_bf16 - ref)))
    ref_mag = float(jnp.max(jnp.abs(ref)))
    assert err <= 0.1 * max(ref_mag, 1e-3), (
        f"bf16 max abs err = {err} (ref max = {ref_mag})")

    print("KERNEL_OK")
</pallas_src>

<mosaic_0001>
module attributes {stable_mosaic.version = 11 : i64} {
  func.func @kernel(%arg0: i32, %arg1: i32, %arg2: i32, %arg3: memref<1x16x32xf32, #tpu.memory_space<vmem>>, %arg4: memref<1x3x32xf32, #tpu.memory_space<vmem>>, %arg5: memref<1x32xf32, #tpu.memory_space<vmem>>, %arg6: memref<32x256xf32, #tpu.memory_space<vmem>>, %arg7: memref<32x256xf32, #tpu.memory_space<vmem>>, %arg8: memref<256x32xf32, #tpu.memory_space<vmem>>, %arg9: memref<1x16x32xf32, #tpu.memory_space<vmem>>, %arg10: memref<16x32xf32, #tpu.memory_space<vmem>>, %arg11: memref<16x32xf32, #tpu.memory_space<vmem>>) attributes {dimension_semantics = [#tpu.dimension_semantics<parallel>, #tpu.dimension_semantics<parallel>, #tpu.dimension_semantics<arbitrary>], iteration_bounds = array<i64: 2, 2, 2>, scalar_prefetch = 0 : i64, scratch_operands = 2 : i64, tpu.core_type = #tpu.core_type<tc>, window_params = [{transform_indices = @transform_0, window_bounds = array<i64: 1, 16, 32>}, {transform_indices = @transform_1, window_bounds = array<i64: 1, 3, 32>}, {pipeline_mode = #tpu.pipeline_mode<synchronous>, transform_indices = @transform_2, window_bounds = array<i64: 1, 32>}, {pipeline_mode = #tpu.pipeline_mode<synchronous>, transform_indices = @transform_3, window_bounds = array<i64: 32, 256>}, {pipeline_mode = #tpu.pipeline_mode<synchronous>, transform_indices = @transform_4, window_bounds = array<i64: 32, 256>}, {pipeline_mode = #tpu.pipeline_mode<synchronous>, transform_indices = @transform_5, window_bounds = array<i64: 256, 32>}, {transform_indices = @transform_6, window_bounds = array<i64: 1, 16, 32>}]} {
    %c0_i32 = arith.constant 0 : i32
    %0 = arith.cmpi eq, %arg2, %c0_i32 : i32
    %1 = arith.extui %0 : i1 to i32
    %c0_i32_0 = arith.constant 0 : i32
    %2 = arith.cmpi ne, %1, %c0_i32_0 : i32
    scf.if %2 {
      %c0_13 = arith.constant 0 : index
      %c0_14 = arith.constant 0 : index
      %c0_15 = arith.constant 0 : index
      %28 = vector.load %arg3[%c0_13, %c0_14, %c0_15] : memref<1x16x32xf32, #tpu.memory_space<vmem>>, vector<1x16x32xf32>
      %29 = vector.shape_cast %28 : vector<1x16x32xf32> to vector<16x32xf32>
      %cst_16 = arith.constant dense<0.000000e+00> : vector<16xf32>
      %30 = vector.multi_reduction <add>, %29, %cst_16 [1] : vector<16x32xf32> to vector<16xf32>
      %31 = vector.shape_cast %30 : vector<16xf32> to vector<16x1xf32>
      %cst_17 = arith.constant 3.200000e+01 : f32
      %32 = vector.broadcast %cst_17 : f32 to vector<16x1xf32>
      %33 = arith.divf %31, %32 : vector<16x1xf32>
      %34 = vector.broadcast %33 : vector<16x1xf32> to vector<16x32xf32>
      %35 = arith.subf %29, %34 : vector<16x32xf32>
      %36 = arith.mulf %35, %35 : vector<16x32xf32>
      %cst_18 = arith.constant dense<0.000000e+00> : vector<16xf32>
      %37 = vector.multi_reduction <add>, %36, %cst_18 [1] : vector<16x32xf32> to vector<16xf32>
      %38 = vector.shape_cast %37 : vector<16xf32> to vector<16x1xf32>
      %cst_19 = arith.constant 3.200000e+01 : f32
      %39 = vector.broadcast %cst_19 : f32 to vector<16x1xf32>
      %40 = arith.divf %38, %39 : vector<16x1xf32>
      %cst_20 = arith.constant 9.99999974E-6 : f32
      %41 = vector.broadcast %cst_20 : f32 to vector<16x1xf32>
      %42 = arith.addf %40, %41 : vector<16x1xf32>
      %43 = math.rsqrt %42 : vector<16x1xf32>
      %44 = vector.broadcast %43 : vector<16x1xf32> to vector<16x32xf32>
      %45 = arith.mulf %35, %44 : vector<16x32xf32>
      %c0_21 = arith.constant 0 : index
      %c0_22 = arith.constant 0 : index
      %46 = vector.load %arg5[%c0_21, %c0_22] : memref<1x32xf32, #tpu.memory_space<vmem>>, vector<1x32xf32>
      %47 = vector.broadcast %46 : vector<1x32xf32> to vector<16x32xf32>
      %48 = arith.mulf %45, %47 : vector<16x32xf32>
      %c0_23 = arith.constant 0 : index
      %c0_24 = arith.constant 0 : index
      %c0_25 = arith.constant 0 : index
      %49 = vector.load %arg4[%c0_23, %c0_24, %c0_25] : memref<1x3x32xf32, #tpu.memory_space<vmem>>, vector<1x3x32xf32>
      %50 = vector.shape_cast %49 : vector<1x3x32xf32> to vector<3x32xf32>
      %51 = vector.extract_strided_slice %50 {offsets = [0, 0], sizes = [1, 32], strides = [1, 1]} : vector<3x32xf32> to vector<1x32xf32>
      %cst_26 = arith.constant 1.000000e+00 : f32
      %52 = vector.broadcast %cst_26 : f32 to vector<1x32xf32>
      %53 = arith.addf %51, %52 : vector<1x32xf32>
      %54 = vector.broadcast %53 : vector<1x32xf32> to vector<16x32xf32>
      %55 = arith.mulf %48, %54 : vector<16x32xf32>
      %56 = vector.extract_strided_slice %50 {offsets = [1, 0], sizes = [1, 32], strides = [1, 1]} : vector<3x32xf32> to vector<1x32xf32>
      %57 = vector.broadcast %56 : vector<1x32xf32> to vector<16x32xf32>
      %58 = arith.addf %55, %57 : vector<16x32xf32>
      %c0_27 = arith.constant 0 : index
      %c0_28 = arith.constant 0 : index
      %59 = vector.load %arg10[%c0_27, %c0_28] : memref<16x32xf32, #tpu.memory_space<vmem>>, vector<16x32xf32>
      tpu.vector_store %arg10[%c0_27, %c0_28], %58 {strides = array<i32>} : memref<16x32xf32, #tpu.memory_space<vmem>>, vector<16x32xf32>,
      %cst_29 = arith.constant 0.000000e+00 : f32
      %60 = vector.broadcast %cst_29 : f32 to vector<16x32xf32>
      %c0_30 = arith.constant 0 : index
      %c0_31 = arith.constant 0 : index
      %61 = vector.load %arg11[%c0_30, %c0_31] : memref<16x32xf32, #tpu.memory_space<vmem>>, vector<16x32xf32>
      tpu.vector_store %arg11[%c0_30, %c0_31], %60 {strides = array<i32>} : memref<16x32xf32, #tpu.memory_space<vmem>>, vector<16x32xf32>,
    } else {
    }
    %c128_i32 = arith.constant 128 : i32
    %3 = arith.muli %arg2, %c128_i32 : i32
    %4 = tpu.assume_multiple %3, 128 : i32
    %c0 = arith.constant 0 : index
    %5 = arith.index_cast %4 : i32 to index
    %6 = vector.load %arg6[%c0, %5] : memref<32x256xf32, #tpu.memory_space<vmem>>, vector<32x128xf32>
    %c0_1 = arith.constant 0 : index
    %7 = arith.index_cast %4 : i32 to index
    %8 = vector.load %arg7[%c0_1, %7] : memref<32x256xf32, #tpu.memory_space<vmem>>, vector<32x128xf32>
    %9 = arith.index_cast %4 : i32 to index
    %c0_2 = arith.constant 0 : index
    %10 = vector.load %arg8[%9, %c0_2] : memref<256x32xf32, #tpu.memory_space<vmem>>, vector<128x32xf32>
    %c0_3 = arith.constant 0 : index
    %c0_4 = arith.constant 0 : index
    %11 = vector.load %arg10[%c0_3, %c0_4] : memref<16x32xf32, #tpu.memory_space<vmem>>, vector<16x32xf32>
    %cst = arith.constant dense<0.000000e+00> : vector<16x128xf32>
    %12 = tpu.matmul %11, %6, %cst {dimension_numbers = #tpu.dot_dimension_numbers<[1], [0], [0], [1], [0, 0, 1, 1], [], []>} : vector<16x32xf32>, vector<32x128xf32>, vector<16x128xf32> -> vector<16x128xf32>
    %cst_5 = arith.constant dense<0.000000e+00> : vector<16x128xf32>
    %13 = tpu.matmul %11, %8, %cst_5 {dimension_numbers = #tpu.dot_dimension_numbers<[1], [0], [0], [1], [0, 0, 1, 1], [], []>} : vector<16x32xf32>, vector<32x128xf32>, vector<16x128xf32> -> vector<16x128xf32>
    %14 = arith.negf %12 : vector<16x128xf32>
    %15 = math.exp %14 : vector<16x128xf32>
    %cst_6 = arith.constant 1.000000e+00 : f32
    %16 = vector.broadcast %cst_6 : f32 to vector<16x128xf32>
    %17 = arith.addf %16, %15 : vector<16x128xf32>
    %18 = arith.divf %16, %17 : vector<16x128xf32>
    %19 = arith.mulf %12, %18 : vector<16x128xf32>
    %20 = arith.mulf %19, %13 : vector<16x128xf32>
    %c0_7 = arith.constant 0 : index
    %c0_8 = arith.constant 0 : index
    %21 = vector.load %arg11[%c0_7, %c0_8] : memref<16x32xf32, #tpu.memory_space<vmem>>, vector<16x32xf32>
    %cst_9 = arith.constant dense<0.000000e+00> : vector<16x32xf32>
    %22 = tpu.matmul %20, %10, %cst_9 {dimension_numbers = #tpu.dot_dimension_numbers<[1], [0], [0], [1], [0, 0, 1, 1], [], []>} : vector<16x128xf32>, vector<128x32xf32>, vector<16x32xf32> -> vector<16x32xf32>
    %23 = arith.addf %21, %22 : vector<16x32xf32>
    %c0_10 = arith.constant 0 : index
    %c0_11 = arith.constant 0 : index
    %24 = vector.load %arg11[%c0_10, %c0_11] : memref<16x32xf32, #tpu.memory_space<vmem>>, vector<16x32xf32>
    tpu.vector_store %arg11[%c0_10, %c0_11], %23 {strides = array<i32>} : memref<16x32xf32, #tpu.memory_space<vmem>>, vector<16x32xf32>,
    %c1_i32 = arith.constant 1 : i32
    %25 = arith.cmpi eq, %arg2, %c1_i32 : i32
    %26 = arith.extui %25 : i1 to i32
    %c0_i32_12 = arith.constant 0 : i32
    %27 = arith.cmpi ne, %26, %c0_i32_12 : i32
    scf.if %27 {
      %c0_13 = arith.constant 0 : index
      %c0_14 = arith.constant 0 : index
      %c0_15 = arith.constant 0 : index
      %28 = vector.load %arg4[%c0_13, %c0_14, %c0_15] : memref<1x3x32xf32, #tpu.memory_space<vmem>>, vector<1x3x32xf32>
      %29 = vector.shape_cast %28 : vector<1x3x32xf32> to vector<3x32xf32>
      %30 = vector.extract_strided_slice %29 {offsets = [2, 0], sizes = [1, 32], strides = [1, 1]} : vector<3x32xf32> to vector<1x32xf32>
      %c0_16 = arith.constant 0 : index
      %c0_17 = arith.constant 0 : index
      %31 = vector.load %arg11[%c0_16, %c0_17] : memref<16x32xf32, #tpu.memory_space<vmem>>, vector<16x32xf32>
      %32 = vector.broadcast %30 : vector<1x32xf32> to vector<16x32xf32>
      %33 = arith.mulf %31, %32 : vector<16x32xf32>
      %c0_18 = arith.constant 0 : index
      %c0_19 = arith.constant 0 : index
      %c0_20 = arith.constant 0 : index
      %34 = vector.load %arg9[%c0_18, %c0_19, %c0_20] : memref<1x16x32xf32, #tpu.memory_space<vmem>>, vector<1x16x32xf32>
      %35 = vector.shape_cast %34 : vector<1x16x32xf32> to vector<16x32xf32>
      %36 = vector.shape_cast %33 : vector<16x32xf32> to vector<1x16x32xf32>
      tpu.vector_store %arg9[%c0_18, %c0_19, %c0_20], %36 {strides = array<i32>} : memref<1x16x32xf32, #tpu.memory_space<vmem>>, vector<1x16x32xf32>,
    } else {
    }
    return
  }
  func.func @transform_0(%arg0: i32, %arg1: i32, %arg2: i32) -> (i32, i32, i32) {
    %c0_i32 = arith.constant 0 : i32
    %c0_i32_0 = arith.constant 0 : i32
    return %arg0, %arg1, %c0_i32 : i32, i32, i32
  }
  func.func @transform_1(%arg0: i32, %arg1: i32, %arg2: i32) -> (i32, i32, i32) {
    %c0_i32 = arith.constant 0 : i32
    %c0_i32_0 = arith.constant 0 : i32
    %c0_i32_1 = arith.constant 0 : i32
    return %arg0, %c0_i32, %c0_i32_0 : i32, i32, i32
  }
  func.func @transform_2(%arg0: i32, %arg1: i32, %arg2: i32) -> (i32, i32) {
    %c0_i32 = arith.constant 0 : i32
    %c0_i32_0 = arith.constant 0 : i32
    %c0_i32_1 = arith.constant 0 : i32
    return %c0_i32, %c0_i32_0 : i32, i32
  }
  func.func @transform_3(%arg0: i32, %arg1: i32, %arg2: i32) -> (i32, i32) {
    %c0_i32 = arith.constant 0 : i32
    %c0_i32_0 = arith.constant 0 : i32
    %c0_i32_1 = arith.constant 0 : i32
    return %c0_i32, %c0_i32_0 : i32, i32
  }
  func.func @transform_4(%arg0: i32, %arg1: i32, %arg2: i32) -> (i32, i32) {
    %c0_i32 = arith.constant 0 : i32
    %c0_i32_0 = arith.constant 0 : i32
    %c0_i32_1 = arith.constant 0 : i32
    return %c0_i32, %c0_i32_0 : i32, i32
  }
  func.func @transform_5(%arg0: i32, %arg1: i32, %arg2: i32) -> (i32, i32) {
    %c0_i32 = arith.constant 0 : i32
    %c0_i32_0 = arith.constant 0 : i32
    %c0_i32_1 = arith.constant 0 : i32
    return %c0_i32, %c0_i32_0 : i32, i32
  }
  func.func @transform_6(%arg0: i32, %arg1: i32, %arg2: i32) -> (i32, i32, i32) {
    %c0_i32 = arith.constant 0 : i32
    %c0_i32_0 = arith.constant 0 : i32
    return %arg0, %arg1, %c0_i32 : i32, i32, i32
  }
}

</mosaic_0001>

<bundles_post_ra>
// kernel: tpu_custom_call.1
= control target key start
LH: loop header
LB: loop body
LE: loop exit
PB: predicated region body
PF: predicated region fallthrough
CT: control target
= control target key end

     0   :  { %11 = vsyncpa [#allocation5], 0  ;;  %s1439_s0 = inlined_call_operand.vmem [shape: f32[2,32,32], index: 0, kind: input, shape index: {}]   ;;  %s1440_s1 = inlined_call_operand.vmem [shape: f32[2,3,32], index: 1, kind: input, shape index: {}]   ;;  %s1441_s2 = inlined_call_operand.vmem [shape: f32[1,32], index: 2, kind: input, shape index: {}]   ;;  %s1442_s3 = inlined_call_operand.vmem [shape: f32[32,256], index: 3, kind: input, shape index: {}]   ;;  %s1443_s4 = inlined_call_operand.vmem [shape: f32[32,256], index: 4, kind: input, shape index: {}]   ;;  %s1444_s5 = inlined_call_operand.vmem [shape: f32[256,32], index: 5, kind: input, shape index: {}]   ;;  %s1445_s6 = inlined_call_operand.hbm [shape: f32[2,32,32], index: 6, kind: output, shape index: {}]  }
   0x1   :  { %13 = vsyncpa [#allocation5 + $0x1], 0  ;;  %s1207_s21 = smov 0   ;;  %s1209_s22 = smov 0  }
   0x2   :  { %s1211_s23 = smov 0   ;;  %s1213_s24 = smov 0  }
   0x3   :  { %s1215_s25 = smov 0   ;;  %s1217_s26 = smov 0  }
   0x4   :  { %s1219_s27 = smov 0   ;;  %s1221_s28 = smov 0  }
   0x5   :  { %s1223_s29 = smov 0   ;;  %s1225_s30 = smov 0  }
   0x6 LB: > { %1451 = sst [smem:[#allocation7_spill]] %s1154_s27  ;;  %s791_s7 = sadd.s32 4294967295, %s1166_s30   ;;  %s1166_s30 = sphi %s1225_s30, %s19_s30   ;;  %s1162_s29 = sphi %s1223_s29, %s1464_s29   ;;  %s1158_s28 = sphi %s1221_s28, %s1463_s28   ;;  %s1154_s27 = sphi %s1219_s27, %s1462_s27   ;;  %s1150_s26 = sphi %s1217_s26, %s1461_s26   ;;  %s1146_s25 = sphi %s1215_s25, %s1460_s25   ;;  %s1142_s24 = sphi %s1213_s24, %s1459_s24   ;;  %s1138_s23 = sphi %s1211_s23, %s1467_s23   ;;  %s1134_s22 = sphi %s1209_s22, %s1466_s22   ;;  %s1130_s21 = sphi %s1207_s21, %s1465_s21  }
   0x7   : > { %1452 = sst [smem:[#allocation8_spill]] %s1158_s28  ;;  %s792_s8 = sadd.s32 4294967294, %s1166_s30  }
   0x8   : > { %1453 = sst [smem:[#allocation9_spill]] %s1162_s29  ;;  %s31_s9 = sadd.s32 1, %s1154_s27 }
   0x9   : > { %p32_p0 = scmp.ge.s32.totalorder %s31_s9, 2  ;;  %s34_s10 = sadd.s32 1, %s1158_s28 }
   0xa   : > { %s38_s11 = sadd.s32 1, %s1162_s29  ;;  %p195_p1 = scmp.ne.s32.totalorder %s1138_s23, %s1134_s22 }
   0xb   : > { %s1469_s9 = smov (%p32_p0, %s31_s9), 0  ;;  %s1471_s10 = smov (!%p32_p0, %s34_s10), %s1158_s28 }
   0xc   : > { %1454 = sst [smem:[#allocation10_spill]] %s1469_s9  ;;  %p196_p2 = scmp.eq.s32.totalorder %s791_s7, 7 }
   0xd   : > { %p201_p3 = scmp.ne.s32.totalorder %s1134_s22, %s1130_s21  ;;  %p36_p4 = scmp.ge.s32.totalorder %s1471_s10, 2 }
   0xe   : > { %p202_p5 = scmp.eq.s32.totalorder %s792_s8, 7  ;;  %p1269_p6 = por %p196_p2, %p195_p1 }
   0xf   : > { %s1473_s10 = smov (%p36_p4, %s1471_s10), 0  ;;  %s1475_s11 = smov (!%p36_p4, %s38_s11), %s1162_s29 }
  0x10   : > { %1456 = sst [smem:[#allocation11_spill]] %s1473_s10  ;;  %p1276_p7 = por %p202_p5, %p201_p3 }
  0x11   : > { %p795_p8 = scmp.ge.s32.totalorder %s1166_s30, 1  ;;  %p40_p9 = scmp.ge.s32.totalorder %s1475_s11, 2 }
  0x12   : > { %p252_p10 = scmp.lt.s32.totalorder %s1166_s30, 9  ;;  %s181_s14 = ssub.s32 %s1158_s28, %s1473_s10 }
  0x13   : > { %s1477_s11 = smov (%p40_p9, %s1475_s11), 0  ;;  %s185_s17 = sadd.s32 1, %s1138_s23 }
  0x14   : > { %1458 = sst [smem:[#allocation12_spill]] %s1477_s11  ;;  %p253_p11 = pnand %p795_p8, %p252_p10 }
  0x15   : > { %s180_s15 = ssub.s32 %s1162_s29, %s1477_s11  ;;  %s287_s19 = sand.u32 (!%p253_p11), 1, %s1134_s22  }
  0x16   : > { %s182_s16 = sor.u32 %s181_s14, %s180_s15  ;;  %256 = sbr.rel (%p253_p11) target bundleno = 868 (0x364), region = 44 }
  0x17   : > { %p183_p12 = scmp.eq.s32.totalorder %s182_s16, 0  ;;  %s1294_s20 = sshll.u32 (!%p253_p11), %s1146_s25, 1 }
  0x18   : > { %s796_s7 = sshll.u32 (!%p253_p11), %s287_s19, 4  ;;  %p291_p13 = scmp.lt.s32.totalorder (!%p253_p11), %s1150_s26, 1 }
  0x19   : > { %s1290_s18 = scalar_select %p183_p12, %s1138_s23, %s185_s17  }
  0x1a   : > { %p293_p0 = scmp.lt.s32.totalorder (!%p253_p11), %s1294_s20, 3  ;;  %s1310_s27 = scalar_lea.vmem (!%p253_p11), [#allocation4], %s796_s7 }
  0x1b   : > { %p801_p1 = scmp.ne.s32.totalorder (!%p253_p11), %s1142_s24, 0 }
  0x1d   : > { %s292_s8 = scalar_select %p291_p13, %s1150_s26, 1 }
  0x1e   : > { %s294_s14 = scalar_select %p293_p0, %s1294_s20, 3 }
  0x1f   : > { %s798_s15 = sshll.u32 %s292_s8, 2  ;;  %308 = sbr.rel (%p801_p1) target bundleno = 356 (0x164), region = 48  ;;  %vm311_vm0 = vcmask (!%p801_p1), 261120   ;;  %v1168_v3 = vmov (!%p801_p1), 0.0   ;;  %v350_v18 = vlaneseq (!%p801_p1)  ;;  %v802_v28 = vld [vmem:[%s1441_s2] ss:$0 sm:$0xff] (!%p801_p1) }
  0x20   : > { %s296_s16 = sadd.s32 %s798_s15, %s294_s14  ;;  %s1305_s10 = scalar_lea.vmem %s1440_s1, %s798_s15  ;;  %364 = vst.msk [vmem:[#allocation3] sm:$0xff] (!%p801_p1), %vm311_vm0, %v1168_v3  ;;  %365 = vst.msk [vmem:[#allocation3 + $0x8] sm:$0xff] (!%p801_p1), %vm311_vm0, %v1168_v3 }
  0x21   : > { %s799_s9 = sshll.u32 %s296_s16, 3  ;;  %v351_v22 = vshrl.u32 (!%p801_p1), %v350_v18, 7  ;;  %v348_v23 = vld [vmem:[%s1305_s10] sm:$0x7] (!%p801_p1) }
  0x22   : > { %s298_s25 = scalar_lea.vmem %s1439_s0, %s799_s9  ;;  %v349_v24 = vadd.f32 (!%p801_p1), 1.0, %v348_v23 }
  0x23   : > { %v309_v0 = vld [vmem:[%s298_s25] sm:$0xff] (!%p801_p1)  ;;  %v310_v1 = vld [vmem:[%s298_s25 + $0x8] sm:$0xff] (!%p801_p1)  ;;  %v352_v25 = vsub.s32 (!%p801_p1), 0, %v351_v22  ;;  %v358_v26 = vsub.s32 (!%p801_p1), 1, %v351_v22 }
  0x24   : > { %v312_v2 = vsel (!%p801_p1), %vm311_vm0, %v309_v0, 0.0  ;;  %v315_v4 = vsel (!%p801_p1), %vm311_vm0, %v310_v1, 0.0 }
  0x25   : > { %313 = vadd.xlane.f32.xlu0 (!%p801_p1), %v312_v2  ;;  %v353_v29 = vrot.slane (!%p801_p1), %v349_v24, %v352_v25  ;;  %v359_v31 = vrot.slane (!%p801_p1), %v348_v23, %v358_v26 }
  0x29   : > { %316 = vadd.xlane.f32.xlu0 %v315_v4 }
  0xb2   : > { %v314_v5 = vpop.xlane.xlu0 %313 }
  0xb3   : > { %v319_v6 = vmul.f32 0.03125, %v314_v5 }
  0xb5   : > { %v321_v7 = vsub.f32 %v309_v0, %v319_v6 }
  0xb6   : > { %v317_v8 = vpop.xlane.xlu0 %316 }
  0xb7   : > { %v320_v9 = vmul.f32 0.03125, %v317_v8  ;;  %v323_v10 = vmul.f32 %v321_v7, %v321_v7 }
  0xb9   : > { %v322_v11 = vsub.f32 %v310_v1, %v320_v9  ;;  %v325_v12 = vsel %vm311_vm0, %v323_v10, 0.0 }
  0xba   : > { %326 = vadd.xlane.f32.xlu1 %v325_v12 }
  0xbb   : > { %v324_v13 = vmul.f32 %v322_v11, %v322_v11 }
  0xbd   : > { %v328_v14 = vsel %vm311_vm0, %v324_v13, 0.0 }
  0xbe   : > { %329 = vadd.xlane.f32.xlu1 %v328_v14 }
 0x147   : > { %v327_v15 = vpop.xlane.xlu1 %326 }
 0x148   : > { %v331_v16 = vmul.f32 0.03125, %v327_v15 }
 0x14a   : > { %v333_v17 = vadd.f32 1e-05, %v331_v16 }
 0x14b   : > { %v330_v19 = vpop.xlane.xlu1 %329 }
 0x14c   : > { %1044 = vrsqrt.f32 %v333_v17  ;;  %v332_v20 = vmul.f32 0.03125, %v330_v19 }
 0x14e   : > { %v334_v21 = vadd.f32 1e-05, %v332_v20 }
 0x150   : > { %1046 = vrsqrt.f32 %v334_v21 }
 0x156   : > { %v1045_v27 = vpop.eup %1044 }
 0x157   : > { %v337_v30 = vmul.f32 %v1045_v27, %v321_v7 }
 0x159   : > { %v346_v32 = vmul.f32 %v802_v28, %v337_v30 }
 0x15a   : > { %v1047_v33 = vpop.eup %1046 }
 0x15b   : > { %v354_v34 = vmul.f32 %v353_v29, %v346_v32  ;;  %v338_v35 = vmul.f32 %v1047_v33, %v322_v11 }
 0x15d   : > { %v360_v36 = vadd.f32 %v359_v31, %v354_v34  ;;  %v347_v37 = vmul.f32 %v802_v28, %v338_v35 }
 0x15f   : > { %362 = vst.msk [vmem:[#allocation2] sm:$0xff] %vm311_vm0, %v360_v36  ;;  %v355_v38 = vmul.f32 %v353_v29, %v347_v37 }
 0x161   : > { %v361_v39 = vadd.f32 %v359_v31, %v355_v38 }
 0x163   : > { %363 = vst.msk [vmem:[#allocation2 + $0x8] sm:$0xff] %vm311_vm0, %v361_v39 }
 0x164 PF: > { %s803_s9 = sshll.u32 %s1142_s24, 7  ;;  %vm400_vm1 = vcmask 261120   ;;  %p812_p2 = scmp.ne.s32.totalorder %s1142_s24, 1 }
 0x165   : > { %s367_s11 = sshra.s32 %s803_s9, 7  ;;  %v574_v30 = vld [vmem:[#allocation3 + $0x8] sm:$0xff]  ;;  %v573_v31 = vld [vmem:[#allocation3] sm:$0xff]  ;;  %v661_v36 = vlaneseq (!%p812_p2)  ;;  %v658_v38 = vld [vmem:[%s1305_s10] sm:$0x7] (!%p812_p2) }
 0x166   : > { %v398_v40 = vld [vmem:[#allocation2] sm:$0xff]  ;;  %s804_s7 = sshll.u32 %s367_s11, 3  ;;  %s1343_s11 = scalar_lea.vmem %s1444_s5, %s803_s9 }
 0x167   : > { %857 = vmatprep.mubr.msk.f32.mxu1 %vm400_vm1, %v398_v40  ;;  %s370_s15 = scalar_lea.vmem %s1442_s3, %s804_s7  ;;  %s376_s25 = scalar_lea.vmem %s1443_s4, %s804_s7  ;;  %v382_v54 = vld [vmem:[%s1343_s11] sm:$0xff]  ;;  %v383_v55 = vld [vmem:[%s1343_s11 + $0x8] sm:$0xff]  ;;  %v384_v57 = vld [vmem:[%s1343_s11 + $0x10] sm:$0xff]  ;;  %v662_v37 = vshrl.u32 (!%p812_p2), %v661_v36, 7 }
 0x168   : > { %v371_v41 = vld [vmem:[%s370_s15] sm:$0xff]  ;;  %v372_v42 = vld [vmem:[%s370_s15 + $0x10] sm:$0xff]  ;;  %v922_v56 = vpack.c.bf16 %v383_v55, %v382_v54  ;;  %v385_v58 = vld [vmem:[%s1343_s11 + $0x18] sm:$0xff] }
 0x169   : > { %v373_v43 = vld [vmem:[%s370_s15 + $0x20] sm:$0xff]  ;;  %v906_v44 = vpack.c.bf16 %v372_v42, %v371_v41  ;;  %v374_v45 = vld [vmem:[%s370_s15 + $0x30] sm:$0xff]  ;;  %v926_v59 = vpack.c.bf16 %v385_v58, %v384_v57  ;;  %v387_v61 = vld [vmem:[%s1343_s11 + $0x28] sm:$0xff]  ;;  %v663_v39 = vsub.s32 (!%p812_p2), 2, %v662_v37 }
 0x16a   : > { %v910_v46 = vpack.c.bf16 %v374_v45, %v373_v43  ;;  %v377_v47 = vld [vmem:[%s376_s25] sm:$0xff]  ;;  %v378_v48 = vld [vmem:[%s376_s25 + $0x10] sm:$0xff]  ;;  %v399_v52 = vld [vmem:[#allocation2 + $0x8] sm:$0xff]  ;;  %923 = vmatprep.subr.bf16.mxu0 %v922_v56 }
 0x16b   : > { %907 = vmatprep.subr.bf16.mxu1 %v906_v44  ;;  %v914_v49 = vpack.c.bf16 %v378_v48, %v377_v47  ;;  %v379_v50 = vld [vmem:[%s376_s25 + $0x20] sm:$0xff]  ;;  %v380_v51 = vld [vmem:[%s376_s25 + $0x30] sm:$0xff]  ;;  %925 = vmatpush3.bf16.msra.mxu0 %v922_v56  ;;  %v389_v0 = vld [vmem:[%s1343_s11 + $0x38] sm:$0xff]  ;;  %v664_v42 = vrot.slane (!%p812_p2), %v658_v38, %v663_v39 }
 0x16c   : > { %909 = vmatpush3.bf16.msra.mxu1 %v906_v44  ;;  %v918_v53 = vpack.c.bf16 %v380_v51, %v379_v50  ;;  %927 = vmatprep.subr.bf16.mxu0 %v926_v59  ;;  %v386_v60 = vld [vmem:[%s1343_s11 + $0x20] sm:$0xff]  ;;  %v388_v63 = vld [vmem:[%s1343_s11 + $0x30] sm:$0xff]  ;;  %v391_v3 = vld [vmem:[%s1343_s11 + $0x48] sm:$0xff] }
 0x16d   : > { %911 = vmatprep.subr.bf16.mxu1 %v910_v46  ;;  %v930_v62 = vpack.c.bf16 %v387_v61, %v386_v60  ;;  %v934_v1 = vpack.c.bf16 %v389_v0, %v388_v63  ;;  %v390_v2 = vld [vmem:[%s1343_s11 + $0x40] sm:$0xff]  ;;  %v392_v5 = vld [vmem:[%s1343_s11 + $0x50] sm:$0xff]  ;;  %v393_v6 = vld [vmem:[%s1343_s11 + $0x58] sm:$0xff] }
 0x16e   : > { %v938_v4 = vpack.c.bf16 %v391_v3, %v390_v2  ;;  %v942_v7 = vpack.c.bf16 %v393_v6, %v392_v5  ;;  %v394_v8 = vld [vmem:[%s1343_s11 + $0x60] sm:$0xff]  ;;  %v395_v9 = vld [vmem:[%s1343_s11 + $0x68] sm:$0xff]  ;;  %v396_v11 = vld [vmem:[%s1343_s11 + $0x70] sm:$0xff] }
 0x16f   : > { %929 = vmatpush3.bf16.msra.mxu0 %v926_v59  ;;  %v946_v10 = vpack.c.bf16 %v395_v9, %v394_v8  ;;  %v397_v12 = vld [vmem:[%s1343_s11 + $0x78] sm:$0xff] }
 0x170   : > { %913 = vmatpush3.bf16.msra.mxu1 %v910_v46  ;;  %931 = vmatprep.subr.bf16.mxu0 %v930_v62  ;;  %v950_v13 = vpack.c.bf16 %v397_v12, %v396_v11 }
 0x171   : > { %915 = vmatprep.subr.bf16.mxu1 %v914_v49 }
 0x173   : > { %858 = vmatmul.mubr.msk.f32.vlgmr.msra.gmra.mrb[0].mxu1 %vm400_vm1, %v399_v52  ;;  %933 = vmatpush3.bf16.msra.mxu0 %v930_v62 }
 0x174   : > { %917 = vmatpush3.bf16.msra.mxu1 %v914_v49  ;;  %868 = vmatprep.mubr.msk.f32.mxu1 %vm400_vm1, %v398_v40 }
 0x175   : > { %919 = vmatprep.subr.bf16.mxu1 %v918_v53  ;;  %935 = vmatprep.subr.bf16.mxu0 %v934_v1 }
 0x177   : > { %937 = vmatpush3.bf16.msra.mxu0 %v934_v1 }
 0x178   : > { %921 = vmatpush3.bf16.msra.mxu1 %v918_v53  ;;  %939 = vmatprep.subr.bf16.mxu0 %v938_v4 }
 0x17b   : > { %869 = vmatmul.mubr.msk.f32.vlgmr.msra.gmra.mrb[2].mxu1 %vm400_vm1, %v399_v52  ;;  %941 = vmatpush3.bf16.msra.mxu0 %v938_v4 }
 0x17c   : > { %943 = vmatprep.subr.bf16.mxu0 %v942_v7 }
 0x17f   : > { %945 = vmatpush3.bf16.msra.mxu0 %v942_v7 }
 0x180   : > { %947 = vmatprep.subr.bf16.mxu0 %v946_v10 }
 0x183   : > { %949 = vmatpush3.bf16.msra.mxu0 %v946_v10 }
 0x184   : > { %951 = vmatprep.subr.bf16.mxu0 %v950_v13 }
 0x187   : > { %953 = vmatpush3.bf16.msra.mxu0 %v950_v13 }
 0x246   : > { %v859_v14 = vpop.f32.mrb[0].mxu1 }
 0x247   : > { %v811_v15 = vmul.f32 -1.442695, %v859_v14  ;;  %v473_v16 = vpop.f32.mrb[1].mxu1 }
 0x248   : > { %v810_v17 = vmul.f32 -1.442695, %v473_v16 }
 0x249   : > { %1048 = vpow2.f32 %v811_v15 }
 0x24a   : > { %1050 = vpow2.f32 %v810_v17 }
 0x24e   : > { %v870_v18 = vpop.f32.mrb[2].mxu1 }
 0x24f   : > { %v548_v19 = vpop.f32.mrb[3].mxu1 }
 0x253   : > { %v1049_v20 = vpop.eup %1048 }
 0x254   : > { %v1051_v21 = vpop.eup %1050  ;;  %v564_v22 = vadd.f32 1.0, %v1049_v20 }
 0x255   : > { %v563_v23 = vadd.f32 1.0, %v1051_v21 }
 0x256   : > { %1052 = vrcp.f32 %v564_v22 }
 0x257   : > { %1054 = vrcp.f32 %v563_v23 }
 0x260   : > { %v1053_v24 = vpop.eup %1052 }
 0x261   : > { %v1055_v25 = vpop.eup %1054  ;;  %v570_v26 = vmul.f32 %v1053_v24, %v859_v14 }
 0x262   : > { %v569_v27 = vmul.f32 %v1055_v25, %v473_v16 }
 0x263   : > { %v572_v28 = vmul.f32 %v870_v18, %v570_v26 }
 0x264   : > { %v571_v29 = vmul.f32 %v569_v27, %v548_v19 }
 0x266   : > { %903 = vmatprep.mubr.f32.mxu0 %v571_v29 }
 0x267   : > { %904 = vmatmul.mubr.f32.vlgmr.msra.gmra.mrb[0].mxu0 %v572_v28 }
 0x338   : > { %657 = sbr.rel (%p812_p2) target bundleno = 841 (0x349), region = 52 }
 0x33a   : > { %v905_v32 = vpop.f32.mrb[0].mxu0 }
 0x33b   : > { %v651_v33 = vadd.f32 %v905_v32, %v574_v30  ;;  %v641_v34 = vpop.f32.mrb[1].mxu0 }
 0x33c   : > { %v650_v35 = vadd.f32 %v641_v34, %v573_v31 }
 0x33d   : > { %653 = vst.msk [vmem:[#allocation3 + $0x8] sm:$0xff] %vm400_vm1, %v651_v33 }
 0x33e   : > { %652 = vst.msk [vmem:[#allocation3] sm:$0xff] %vm400_vm1, %v650_v35 }
 0x344   : > { %v660_v41 = vld [vmem:[#allocation3 + $0x8] sm:$0xff] }
 0x345   : > { %v659_v40 = vld [vmem:[#allocation3] sm:$0xff]  ;;  %v666_v44 = vmul.f32 %v664_v42, %v660_v41 }
 0x346   : > { %v665_v43 = vmul.f32 %v664_v42, %v659_v40 }
 0x347   : > { %668 = vst.msk [vmem:[%s1310_s27 + $0x8] sm:$0xff] %vm400_vm1, %v666_v44 }
 0x348   : > { %667 = vst.msk [vmem:[%s1310_s27] sm:$0xff] %vm400_vm1, %v665_v43 }
 0x349 PF: > { %s815_s24 = sshll.u32 %s1150_s26, 2  ;;  %s685_s7 = sshll.u32 %s1310_s27, 4  ;;  %s1372_s7 = int_to_ptr.vmem [resolvable:$true] %s685_s7 }
 0x34a   : > { %s682_s9 = sadd.s32 %s815_s24, %s1294_s20  ;;  %s1381_s16 = scalar_lea.sflag [#allocation5], %s287_s19 }
 0x34b   : > { %s816_s10 = sshll.u32 %s682_s9, 7  ;;  %s1056_s17 = scalar_lea.vmem %s1372_s7, 256 }
 0x34c   : > { %s1377_s15 = scalar_lea.hbm %s1445_s6, %s816_s10  ;;  %p1057_p3 = scmp.ne.s32.totalorder %s1372_s7, %s1056_s17 }
 0x34d   : > { %s1169_s26 = smov [#allocation4]  }
 0x34e   : > { %p1058_p4 = pnand %p1057_p3, %p1269_p6  ;;  %s1060_s27 = sshll.u32 %s1169_s26, 4  ;;  %s1061_s27 = int_to_ptr.vmem [resolvable:$false] %s1060_s27 }
 0x34f   : > { %s1062_s20 = scalar_lea.vmem %s1061_s27, 512  ;;  %p1063_p8 = scmp.lt.s32.totalorder %s1372_s7, %s1061_s27 }
 0x350   : > { %p1059_p5 = pneg %p1058_p4  ;;  %p1064_p9 = scmp.lt.s32.totalorder %s1062_s20, %s1056_s17 }
 0x352   : > { %p1065_p10 = por %p1064_p9, %p1063_p8 }
 0x354   : > { %p1066_p11 = pnand %p1065_p10, %p1059_p5 }
 0x356   : > { %1069 = shalt.err (!%p1066_p11)
}
 0x357   : > { %s1070_s19 = scalar_lea.hbm %s1377_s15, 256  ;;  %s1074_s29 = scalar_lea.hbm %s1445_s6, 1024 }
 0x358   : > { %p1071_p12 = scmp.ne.s32.totalorder %s1377_s15, %s1070_s19  ;;  %p1075_p1 = scmp.lt.u32.totalorder %s1377_s15, %s1445_s6 }
 0x359   : > { %p1076_p2 = scmp.lt.u32.totalorder %s1074_s29, %s1070_s19  ;;  %p1078_p4 = scmp.lt.u32.totalorder %s1070_s19, %s1377_s15 }
 0x35a   : > { %p1072_p13 = pnand %p1071_p12, %p1269_p6 }
 0x35b   : > { %p1077_p3 = por %p1076_p2, %p1075_p1 }
 0x35c   : > { %p1073_p0 = pneg %p1072_p13 }
 0x35d   : > { %p1079_p5 = por %p1078_p4, %p1077_p3 }
 0x35f   : > { %p1080_p8 = pnand %p1079_p5, %p1073_p0 }
 0x361   : > { %1083 = shalt.err (!%p1080_p8)
}
 0x362   : > { %s1170_s9 = smov 128   ;;  %s1171_s10 = smov 8  }
 0x363   : > { %954 = dma.vmem_to_hbm [thread:$0]  (%p1269_p6), %s1372_s7, 256, %s1377_s15, %s1381_s16, %s1170_s9, %s1170_s9, %s1171_s10  }
 0x364 PF: > { %p960_p9 = scmp.ge.s32.totalorder %s1166_s30, 2  ;;  %s700_s8 = sand.u32 1, %s1130_s21  }
 0x365   : > { %s701_s14 = scalar_lea.sflag [#allocation5], %s700_s8 }
 0x366   : > { %p957_p10 = pnand %p960_p9, %p1276_p7 }
 0x368   : > { %1125 = dma.done.wait (!%p957_p10), %s701_s14, 256  }
 0x369   : > { %1127 = vsyncadd (!%p957_p10), %s701_s14, 4294967040  ;;  %s19_s30 = sadd.s32 1, %s1166_s30   ;;  %s1459_s24 = sld [smem:[#allocation7_spill]] }
 0x36a   : > { %p16_p11 = scmp.ge.s32.totalorder %s19_s30, 10   ;;  %s1460_s25 = sld [smem:[#allocation8_spill]] }
 0x36b   : > { %s1461_s26 = sld [smem:[#allocation9_spill]]  ;;  %s1462_s27 = sld [smem:[#allocation10_spill]] }
 0x36c   : > { %s1463_s28 = sld [smem:[#allocation11_spill]]  ;;  %s1464_s29 = sld [smem:[#allocation12_spill]] }
 0x36d   : > { %s1465_s21 = smov %s1134_s22  ;;  %s1466_s22 = smov %s1138_s23 }
 0x36e   : > { %s1467_s23 = smov %s1290_s18  ;;  %18 = sbr.rel (!%p16_p11) target bundleno = 6 (0x6), region = 93 }
 0x375   :  { %706 = vsyncpa [#allocation5], 1 }
 0x376   :  { %708 = vsyncpa [#allocation5 + $0x1], 1 }

</bundles_post_ra>
